<compile_context>
chip_gen: v6e
topology: v6e:2x2x1
jax: 0.10.0
libtpu: 0.0.40
codegen_flags: <defaults>
</compile_context>

<pallas_src>
import jax
import jax.numpy as jnp
from jax.experimental import pallas as pl
from jax.experimental.pallas import tpu as pltpu

IN_DIM = 768
HID_DIM = 128
OUT_DIM = 3
PAD_OUT = 128          # lane-padded width for the final linear / softmax
BLOCK_B = 1024         # batch tile (rows); safe for v5e/v6e/v7x VMEM budgets


def _discriminator_kernel(x_ref, w1_ref, b1_ref, w2_ref, b2_ref, o_ref):
    # ---- Linear(768 -> 128) on the MXU (bf16 in, f32 acc) + bias + ReLU ----
    h = jnp.dot(x_ref[...], w1_ref[...], preferred_element_type=jnp.float32)
    h = jnp.maximum(h + b1_ref[...], 0.0)

    # ---- Dropout(0.1) eval-mode = identity; following ReLU is idempotent on h >= 0 ----

    # ---- Linear(128 -> 3), lane-padded to 128, + bias + ReLU ----
    logits = jnp.dot(h.astype(jnp.bfloat16), w2_ref[...],
                     preferred_element_type=jnp.float32)
    logits = jnp.maximum(logits + b2_ref[...], 0.0)

    # ---- Softmax over the real 3 output columns (dim=1 for 2-D input in PyTorch) ----
    col = jax.lax.broadcasted_iota(jnp.int32, logits.shape, dimension=1)
    valid = col < OUT_DIM
    masked = jnp.where(valid, logits, -jnp.inf)
    m = jnp.max(masked, axis=-1, keepdims=True)
    e = jnp.where(valid, jnp.exp(masked - m), 0.0)
    denom = jnp.sum(e, axis=-1, keepdims=True)
    o_ref[...] = e * pl.reciprocal(denom, approx=False)


def prepare_params(w1, b1, w2, b2):
    """One-time parameter prep (hoisted out of the per-call path):
    cast matmul weights to bf16 and pad the 3-wide head to 128 lanes."""
    w1_bf = w1.astype(jnp.bfloat16)
    b1_row = b1.reshape(1, HID_DIM).astype(jnp.float32)
    w2_pad = jnp.zeros((HID_DIM, PAD_OUT), jnp.bfloat16).at[:, :OUT_DIM].set(
        w2.astype(jnp.bfloat16))
    b2_pad = jnp.zeros((1, PAD_OUT), jnp.float32).at[:, :OUT_DIM].set(
        b2.astype(jnp.float32))
    return w1_bf, b1_row, w2_pad, b2_pad


@jax.jit
def discriminator_forward(x, w1_bf, b1_row, w2_pad, b2_pad):
    """x: [B, 768] float32 -> probs [B, 3] float32."""
    B = x.shape[0]
    tb = B if B <= BLOCK_B else BLOCK_B          # full-batch block for small B
    grid = (pl.cdiv(B, tb),)
    x_bf = x.astype(jnp.bfloat16)

    out_padded = pl.pallas_call(
        _discriminator_kernel,
        out_shape=jax.ShapeDtypeStruct((B, PAD_OUT), jnp.float32),
        grid=grid,
        in_specs=[
            pl.BlockSpec((tb, IN_DIM), lambda i: (i, 0)),          # x tile (pipelined)
            pl.BlockSpec((IN_DIM, HID_DIM), lambda i: (0, 0)),     # weights stay resident
            pl.BlockSpec((1, HID_DIM), lambda i: (0, 0)),
            pl.BlockSpec((HID_DIM, PAD_OUT), lambda i: (0, 0)),
            pl.BlockSpec((1, PAD_OUT), lambda i: (0, 0)),
        ],
        out_specs=pl.BlockSpec((tb, PAD_OUT), lambda i: (i, 0)),
        compiler_params=pltpu.CompilerParams(
            dimension_semantics=("parallel",)),                    # megacore on v7x
    )(x_bf, w1_bf, b1_row, w2_pad, b2_pad)

    return out_padded[:, :OUT_DIM]


def _init_params(key):
    """Deterministic PyTorch-style init: U(-1/sqrt(fan_in), 1/sqrt(fan_in))."""
    k1, k2, k3, k4 = jax.random.split(key, 4)
    bound1 = 1.0 / jnp.sqrt(jnp.float32(IN_DIM))
    bound2 = 1.0 / jnp.sqrt(jnp.float32(HID_DIM))
    w1 = jax.random.uniform(k1, (IN_DIM, HID_DIM), jnp.float32, -bound1, bound1)
    b1 = jax.random.uniform(k2, (HID_DIM,), jnp.float32, -bound1, bound1)
    w2 = jax.random.uniform(k3, (HID_DIM, OUT_DIM), jnp.float32, -bound2, bound2)
    b2 = jax.random.uniform(k4, (OUT_DIM,), jnp.float32, -bound2, bound2)
    return w1, b1, w2, b2


if __name__ == "__main__":
    key = jax.random.PRNGKey(0)
    kx, kp = jax.random.split(key)

    B = 8
    x = jax.random.normal(kx, (B, IN_DIM), jnp.float32)
    w1, b1, w2, b2 = _init_params(kp)
    params = prepare_params(w1, b1, w2, b2)

    probs = discriminator_forward(x, *params)
    probs = jax.block_until_ready(probs)

    # sanity: shape + rows sum to 1
    assert probs.shape == (B, OUT_DIM)
    assert jnp.allclose(jnp.sum(probs, axis=-1), 1.0, atol=1e-5)

    # pure-JAX reference with the same bf16-input / f32-accumulate matmuls
    h_ref = jnp.maximum(
        jnp.dot(x.astype(jnp.bfloat16), w1.astype(jnp.bfloat16),
                preferred_element_type=jnp.float32) + b1, 0.0)
    logits_ref = jnp.maximum(
        jnp.dot(h_ref.astype(jnp.bfloat16), w2.astype(jnp.bfloat16),
                preferred_element_type=jnp.float32) + b2, 0.0)
    ref = jax.nn.softmax(logits_ref, axis=-1)
    assert jnp.allclose(probs, ref, atol=1e-4), float(jnp.max(jnp.abs(probs - ref)))

    # loose check against the full-f32 PyTorch-equivalent reference
    h32 = jnp.maximum(x @ w1 + b1, 0.0)
    logits32 = jnp.maximum(h32 @ w2 + b2, 0.0)
    ref32 = jax.nn.softmax(logits32, axis=-1)
    assert jnp.allclose(probs, ref32, atol=2e-2), float(jnp.max(jnp.abs(probs - ref32)))

    print("KERNEL_OK")
</pallas_src>

<mosaic_0001>
module attributes {stable_mosaic.version = 11 : i64} {
  func.func @_discriminator_kernel(%arg0: i32, %arg1: memref<8x768xbf16, #tpu.memory_space<vmem>>, %arg2: memref<768x128xbf16, #tpu.memory_space<vmem>>, %arg3: memref<1x128xf32, #tpu.memory_space<vmem>>, %arg4: memref<128x128xbf16, #tpu.memory_space<vmem>>, %arg5: memref<1x128xf32, #tpu.memory_space<vmem>>, %arg6: memref<8x128xf32, #tpu.memory_space<vmem>>) attributes {dimension_semantics = [#tpu.dimension_semantics<parallel>], iteration_bounds = array<i64: 1>, scalar_prefetch = 0 : i64, scratch_operands = 0 : i64, tpu.core_type = #tpu.core_type<tc>, window_params = [{transform_indices = @transform_0, window_bounds = array<i64: 8, 768>}, {pipeline_mode = #tpu.pipeline_mode<synchronous>, transform_indices = @transform_1, window_bounds = array<i64: 768, 128>}, {pipeline_mode = #tpu.pipeline_mode<synchronous>, transform_indices = @transform_2, window_bounds = array<i64: 1, 128>}, {pipeline_mode = #tpu.pipeline_mode<synchronous>, transform_indices = @transform_3, window_bounds = array<i64: 128, 128>}, {pipeline_mode = #tpu.pipeline_mode<synchronous>, transform_indices = @transform_4, window_bounds = array<i64: 1, 128>}, {transform_indices = @transform_5, window_bounds = array<i64: 8, 128>}]} {
    %c0 = arith.constant 0 : index
    %c0_0 = arith.constant 0 : index
    %0 = vector.load %arg1[%c0, %c0_0] : memref<8x768xbf16, #tpu.memory_space<vmem>>, vector<8x768xbf16>
    %c0_1 = arith.constant 0 : index
    %c0_2 = arith.constant 0 : index
    %1 = vector.load %arg2[%c0_1, %c0_2] : memref<768x128xbf16, #tpu.memory_space<vmem>>, vector<768x128xbf16>
    %cst = arith.constant dense<0.000000e+00> : vector<8x128xf32>
    %2 = tpu.matmul %0, %1, %cst {dimension_numbers = #tpu.dot_dimension_numbers<[1], [0], [0], [1], [0, 0, 1, 1], [], []>} : vector<8x768xbf16>, vector<768x128xbf16>, vector<8x128xf32> -> vector<8x128xf32>
    %c0_3 = arith.constant 0 : index
    %c0_4 = arith.constant 0 : index
    %3 = vector.load %arg3[%c0_3, %c0_4] : memref<1x128xf32, #tpu.memory_space<vmem>>, vector<1x128xf32>
    %4 = vector.broadcast %3 : vector<1x128xf32> to vector<8x128xf32>
    %5 = arith.addf %2, %4 : vector<8x128xf32>
    %cst_5 = arith.constant 0.000000e+00 : f32
    %6 = vector.broadcast %cst_5 : f32 to vector<8x128xf32>
    %7 = arith.maximumf %5, %6 : vector<8x128xf32>
    %8 = arith.truncf %7 : vector<8x128xf32> to vector<8x128xbf16>
    %c0_6 = arith.constant 0 : index
    %c0_7 = arith.constant 0 : index
    %9 = vector.load %arg4[%c0_6, %c0_7] : memref<128x128xbf16, #tpu.memory_space<vmem>>, vector<128x128xbf16>
    %cst_8 = arith.constant dense<0.000000e+00> : vector<8x128xf32>
    %10 = tpu.matmul %8, %9, %cst_8 {dimension_numbers = #tpu.dot_dimension_numbers<[1], [0], [0], [1], [0, 0, 1, 1], [], []>} : vector<8x128xbf16>, vector<128x128xbf16>, vector<8x128xf32> -> vector<8x128xf32>
    %c0_9 = arith.constant 0 : index
    %c0_10 = arith.constant 0 : index
    %11 = vector.load %arg5[%c0_9, %c0_10] : memref<1x128xf32, #tpu.memory_space<vmem>>, vector<1x128xf32>
    %12 = vector.broadcast %11 : vector<1x128xf32> to vector<8x128xf32>
    %13 = arith.addf %10, %12 : vector<8x128xf32>
    %cst_11 = arith.constant 0.000000e+00 : f32
    %14 = vector.broadcast %cst_11 : f32 to vector<8x128xf32>
    %15 = arith.maximumf %13, %14 : vector<8x128xf32>
    %16 = tpu.iota {dimensions = array<i32: 1>} : vector<8x128xi32>
    %c3_i32 = arith.constant 3 : i32
    %17 = vector.broadcast %c3_i32 : i32 to vector<8x128xi32>
    %18 = arith.cmpi slt, %16, %17 : vector<8x128xi32>
    %cst_12 = arith.constant 0xFF800000 : f32
    %19 = vector.broadcast %cst_12 : f32 to vector<8x128xf32>
    %20 = arith.select %18, %15, %19 : vector<8x128xi1>, vector<8x128xf32>
    %cst_13 = arith.constant dense<0xFF800000> : vector<8xf32>
    %21 = vector.multi_reduction <maximumf>, %20, %cst_13 [1] : vector<8x128xf32> to vector<8xf32>
    %22 = vector.shape_cast %21 : vector<8xf32> to vector<8x1xf32>
    %23 = vector.broadcast %22 : vector<8x1xf32> to vector<8x128xf32>
    %24 = arith.subf %20, %23 : vector<8x128xf32>
    %25 = math.exp %24 : vector<8x128xf32>
    %cst_14 = arith.constant 0.000000e+00 : f32
    %26 = vector.broadcast %cst_14 : f32 to vector<8x128xf32>
    %27 = arith.select %18, %25, %26 : vector<8x128xi1>, vector<8x128xf32>
    %cst_15 = arith.constant dense<0.000000e+00> : vector<8xf32>
    %28 = vector.multi_reduction <add>, %27, %cst_15 [1] : vector<8x128xf32> to vector<8xf32>
    %29 = vector.shape_cast %28 : vector<8xf32> to vector<8x1xf32>
    %30 = tpu.reciprocal %29 : vector<8x1xf32> -> vector<8x1xf32>
    %31 = vector.broadcast %30 : vector<8x1xf32> to vector<8x128xf32>
    %32 = arith.mulf %27, %31 : vector<8x128xf32>
    %c0_16 = arith.constant 0 : index
    %c0_17 = arith.constant 0 : index
    %33 = vector.load %arg6[%c0_16, %c0_17] : memref<8x128xf32, #tpu.memory_space<vmem>>, vector<8x128xf32>
    tpu.vector_store %arg6[%c0_16, %c0_17], %32 {strides = array<i32>} : memref<8x128xf32, #tpu.memory_space<vmem>>, vector<8x128xf32>,
    return
  }
  func.func @transform_0(%arg0: i32) -> (i32, i32) {
    %c0_i32 = arith.constant 0 : i32
    %c0_i32_0 = arith.constant 0 : i32
    return %arg0, %c0_i32 : i32, i32
  }
  func.func @transform_1(%arg0: i32) -> (i32, i32) {
    %c0_i32 = arith.constant 0 : i32
    %c0_i32_0 = arith.constant 0 : i32
    %c0_i32_1 = arith.constant 0 : i32
    return %c0_i32, %c0_i32_0 : i32, i32
  }
  func.func @transform_2(%arg0: i32) -> (i32, i32) {
    %c0_i32 = arith.constant 0 : i32
    %c0_i32_0 = arith.constant 0 : i32
    %c0_i32_1 = arith.constant 0 : i32
    return %c0_i32, %c0_i32_0 : i32, i32
  }
  func.func @transform_3(%arg0: i32) -> (i32, i32) {
    %c0_i32 = arith.constant 0 : i32
    %c0_i32_0 = arith.constant 0 : i32
    %c0_i32_1 = arith.constant 0 : i32
    return %c0_i32, %c0_i32_0 : i32, i32
  }
  func.func @transform_4(%arg0: i32) -> (i32, i32) {
    %c0_i32 = arith.constant 0 : i32
    %c0_i32_0 = arith.constant 0 : i32
    %c0_i32_1 = arith.constant 0 : i32
    return %c0_i32, %c0_i32_0 : i32, i32
  }
  func.func @transform_5(%arg0: i32) -> (i32, i32) {
    %c0_i32 = arith.constant 0 : i32
    %c0_i32_0 = arith.constant 0 : i32
    return %arg0, %c0_i32 : i32, i32
  }
}

</mosaic_0001>

<bundles_post_ra>
// kernel: discriminator_forward.1
= control target key start
LH: loop header
LB: loop body
LE: loop exit
PB: predicated region body
PF: predicated region fallthrough
CT: control target
= control target key end

     0   :  { %10 = vsyncpa [#allocation3], 0  ;;  %s956_s18 = smov [#allocation2]   ;;  %s1036_s0 = inlined_call_operand.vmem [shape: bf16[8,768], index: 0, kind: input, shape index: {}]   ;;  %s1037_s1 = inlined_call_operand.hbm [shape: bf16[768,128], index: 1, kind: input, shape index: {}]   ;;  %s1038_s2 = inlined_call_operand.vmem [shape: f32[1,128], index: 2, kind: input, shape index: {}]   ;;  %s1039_s3 = inlined_call_operand.vmem [shape: bf16[128,128], index: 3, kind: input, shape index: {}]   ;;  %s1040_s4 = inlined_call_operand.vmem [shape: f32[1,128], index: 4, kind: input, shape index: {}]   ;;  %s1041_s5 = inlined_call_operand.vmem [shape: f32[8,128], index: 5, kind: output, shape index: {}]  }
   0x1   :  { %s18_s19 = sshll.u32 %s956_s18, 4  ;;  %s19_s19 = int_to_ptr.vmem [resolvable:$true] %s18_s19 }
   0x2   :  { %s942_s20 = scalar_lea.vmem %s19_s19, 6144  ;;  %p947_p1 = scmp.lt.s32.totalorder %s19_s19, %s19_s19 }
   0x3   :  { %p943_p0 = scmp.ne.s32.totalorder %s19_s19, %s942_s20  ;;  %p948_p2 = scmp.lt.s32.totalorder %s942_s20, %s942_s20 }
   0x5   :  { %p949_p3 = por %p948_p2, %p947_p1 }
   0x7   :  { %p950_p4 = pnand %p949_p3, %p943_p0 }
   0x9   :  { %953 = shalt.err (!%p950_p4)
}
   0xa   :  { %s957_s21 = smov 64   ;;  %s958_s22 = smov 4  }
   0xb   :  { %24 = dma.hbm_to_vmem [thread:$0]  %s1037_s1, 6144, %s19_s19, [#allocation3], %s957_s21, %s957_s21, %s958_s22  }
   0xc   :  { %954 = dma.done.wait [#allocation3], 6144  }
   0xd   :  { %955 = vsyncadd [#allocation3], 4294961152  ;;  %v868_v0 = vld [vmem:[#allocation2 + $0x78] sm:$0xff]   ;;  %v872_v4 = vld [vmem:[#allocation2 + $0x70] sm:$0xff]   ;;  %v959_v58 = vmov 0.0   ;;  %vm960_vm0 = vmmov 0  }
   0xe   :  { %v869_v1 = vld [vmem:[#allocation2 + $0x38] sm:$0xff]   ;;  %768 = vmatprep.subr.bf16.mxu0 %v868_v0  ;;  %v873_v5 = vld [vmem:[#allocation2 + $0x30] sm:$0xff]   ;;  %v876_v8 = vld [vmem:[#allocation2 + $0x68] sm:$0xff]  }
   0xf   :  { %v870_v2 = vld [vmem:[#allocation2 + $0xf8] sm:$0xff]   ;;  %769 = vmatpush3.bf16.msra.mxu0 %v869_v1  ;;  %v874_v6 = vld [vmem:[#allocation2 + $0xf0] sm:$0xff]   ;;  %v877_v9 = vld [vmem:[#allocation2 + $0x28] sm:$0xff]  }
  0x10   :  { %v871_v3 = vld [vmem:[#allocation2 + $0xb8] sm:$0xff]   ;;  %790 = vmatprep.subr.bf16.mxu1 %v870_v2  ;;  %770 = vmatprep.subr.bf16.mxu0 %v872_v4  ;;  %v875_v7 = vld [vmem:[#allocation2 + $0xb0] sm:$0xff]   ;;  %v878_v10 = vld [vmem:[#allocation2 + $0xe8] sm:$0xff]  }
  0x11   :  { %791 = vmatpush3.bf16.msra.mxu1 %v871_v3  ;;  %v879_v11 = vld [vmem:[#allocation2 + $0xa8] sm:$0xff]   ;;  %v880_v12 = vld [vmem:[#allocation2 + $0x60] sm:$0xff]   ;;  %v884_v16 = vld [vmem:[#allocation2 + $0x58] sm:$0xff]  }
  0x12   :  { %792 = vmatprep.subr.bf16.mxu1 %v874_v6  ;;  %v881_v13 = vld [vmem:[#allocation2 + $0x20] sm:$0xff]   ;;  %v885_v17 = vld [vmem:[#allocation2 + $0x18] sm:$0xff]   ;;  %v888_v20 = vld [vmem:[#allocation2 + $0x50] sm:$0xff]  }
  0x13   :  { %771 = vmatpush3.bf16.msra.mxu0 %v873_v5  ;;  %v882_v14 = vld [vmem:[#allocation2 + $0xe0] sm:$0xff]   ;;  %v886_v18 = vld [vmem:[#allocation2 + $0xd8] sm:$0xff]   ;;  %v889_v21 = vld [vmem:[#allocation2 + $0x10] sm:$0xff]  }
  0x14   :  { %772 = vmatprep.subr.bf16.mxu0 %v876_v8  ;;  %v883_v15 = vld [vmem:[#allocation2 + $0xa0] sm:$0xff]   ;;  %v887_v19 = vld [vmem:[#allocation2 + $0x98] sm:$0xff]   ;;  %v890_v22 = vld [vmem:[#allocation2 + $0xd0] sm:$0xff]  }
  0x15   :  { %793 = vmatpush3.bf16.msra.mxu1 %v875_v7  ;;  %v891_v23 = vld [vmem:[#allocation2 + $0x90] sm:$0xff]   ;;  %v892_v24 = vld [vmem:[#allocation2 + $0x48] sm:$0xff]   ;;  %v896_v28 = vld [vmem:[#allocation2 + $0x40] sm:$0xff]  }
  0x16   :  { %794 = vmatprep.subr.bf16.mxu1 %v878_v10  ;;  %v893_v25 = vld [vmem:[#allocation2 + $0x8] sm:$0xff]   ;;  %v897_v29 = vld [vmem:[#allocation2] sm:$0xff]   ;;  %v902_v35 = vld [vmem:[#allocation2 + $0x178] sm:$0xff]  }
  0x17   :  { %773 = vmatpush3.bf16.msra.mxu0 %v877_v9  ;;  %v894_v26 = vld [vmem:[#allocation2 + $0xc8] sm:$0xff]   ;;  %v898_v30 = vld [vmem:[#allocation2 + $0xc0] sm:$0xff]   ;;  %v905_v39 = vld [vmem:[#allocation2 + $0x138] sm:$0xff]  }
  0x18   :  { %774 = vmatprep.subr.bf16.mxu0 %v880_v12  ;;  %v895_v27 = vld [vmem:[#allocation2 + $0x88] sm:$0xff]   ;;  %v35_v31 = vld [vmem:[%s1036_s0] sm:$0xff]  ;;  %v906_v40 = vld [vmem:[#allocation2 + $0x170] sm:$0xff]  }
  0x19   :  { %795 = vmatpush3.bf16.msra.mxu1 %v879_v11  ;;  %v705_v32 = vcombine.low %v35_v31, %v35_v31  ;;  %v706_v33 = vcombine.high %v35_v31, %v35_v31  ;;  %v901_v34 = vld [vmem:[#allocation2 + $0x80] sm:$0xff]   ;;  %v36_v36 = vld [vmem:[%s1036_s0 + $0x8] sm:$0xff]  ;;  %v907_v41 = vld [vmem:[#allocation2 + $0x130] sm:$0xff]  }
  0x1a   :  { %796 = vmatprep.subr.bf16.mxu1 %v882_v14  ;;  %v707_v37 = vcombine.low %v36_v36, %v36_v36  ;;  %v708_v38 = vcombine.high %v36_v36, %v36_v36  ;;  %v908_v42 = vld [vmem:[#allocation2 + $0x168] sm:$0xff]   ;;  %v910_v44 = vld [vmem:[#allocation2 + $0x160] sm:$0xff]   ;;  %v912_v46 = vld [vmem:[#allocation2 + $0x158] sm:$0xff]  }
  0x1b   :  { %775 = vmatpush3.bf16.msra.mxu0 %v881_v13  ;;  %482 = vmatprep.mubr.bf16.mxu0 %v706_v33  ;;  %v909_v43 = vld [vmem:[#allocation2 + $0x128] sm:$0xff]   ;;  %v911_v45 = vld [vmem:[#allocation2 + $0x120] sm:$0xff]   ;;  %v913_v47 = vld [vmem:[#allocation2 + $0x118] sm:$0xff]  }
  0x1c   :  { %776 = vmatprep.subr.bf16.mxu0 %v884_v16  ;;  %522 = vmatprep.mubr.bf16.mxu1 %v708_v38  ;;  %v914_v48 = vld [vmem:[#allocation2 + $0x150] sm:$0xff]   ;;  %v916_v52 = vld [vmem:[#allocation2 + $0x148] sm:$0xff]   ;;  %v918_v54 = vld [vmem:[#allocation2 + $0x140] sm:$0xff]  }
  0x1d   :  { %797 = vmatpush3.bf16.msra.mxu1 %v883_v15  ;;  %v37_v49 = vld [vmem:[%s1036_s0 + $0x10] sm:$0xff]  ;;  %v917_v53 = vld [vmem:[#allocation2 + $0x108] sm:$0xff]   ;;  %v919_v55 = vld [vmem:[#allocation2 + $0x100] sm:$0xff]  }
  0x1e   :  { %798 = vmatprep.subr.bf16.mxu1 %v886_v18  ;;  %v710_v50 = vcombine.high %v37_v49, %v37_v49  ;;  %v915_v51 = vld [vmem:[#allocation2 + $0x110] sm:$0xff]   ;;  %v709_v56 = vcombine.low %v37_v49, %v37_v49  ;;  %v922_v57 = vld [vmem:[%s1039_s3 + $0x38] sm:$0xff]   ;;  %v924_v60 = vld [vmem:[%s1039_s3 + $0x28] sm:$0xff]  }
  0x1f   :  { %777 = vmatpush3.bf16.msra.mxu0 %v885_v17  ;;  %v923_v59 = vld [vmem:[%s1039_s3 + $0x30] sm:$0xff]   ;;  %v925_v61 = vld [vmem:[%s1039_s3 + $0x20] sm:$0xff]   ;;  %v926_v62 = vld [vmem:[%s1039_s3 + $0x18] sm:$0xff]  }
  0x20   :  { %778 = vmatprep.subr.bf16.mxu0 %v888_v20  ;;  %v927_v63 = vld [vmem:[%s1039_s3 + $0x10] sm:$0xff]   ;;  %v928_v0 = vld [vmem:[%s1039_s3 + $0x8] sm:$0xff]   ;;  %v929_v1 = vld [vmem:[%s1039_s3] sm:$0xff]  }
  0x21   :  { %799 = vmatpush3.bf16.msra.mxu1 %v887_v19  ;;  %v704_v11 = vld [vmem:[%s1038_s2] ss:$0 sm:$0xff] }
  0x22   :  { %800 = vmatprep.subr.bf16.mxu1 %v890_v22 }
  0x23   :  { %779 = vmatpush3.bf16.msra.mxu0 %v889_v21 }
  0x24   :  { %780 = vmatprep.subr.bf16.mxu0 %v892_v24  ;;  %v759_v24 = vld [vmem:[%s1040_s4] ss:$0 sm:$0xff] }
  0x25   :  { %801 = vmatpush3.bf16.msra.mxu1 %v891_v23  ;;  %v684_v23 = vlaneseq }
  0x26   :  { %802 = vmatprep.subr.bf16.mxu1 %v894_v26 }
  0x27   :  { %781 = vmatpush3.bf16.msra.mxu0 %v893_v25  ;;  %v685_v25 = vand.u32 127, %v684_v23 }
  0x28   :  { %782 = vmatprep.subr.bf16.mxu0 %v896_v28 }
  0x29   :  { %803 = vmatpush3.bf16.msra.mxu1 %v895_v27  ;;  %vm686_vm1 = vcmp.lt.s32.totalorder %v685_v25, 3 }
  0x2a   :  { %804 = vmatprep.subr.bf16.mxu1 %v898_v30 }
  0x2b   :  { %783 = vmatpush3.bf16.msra.mxu0 %v897_v29 }
  0x2c   :  { %812 = vmatprep.subr.bf16.mxu0 %v902_v35 }
  0x2d   :  { %805 = vmatpush3.bf16.msra.mxu1 %v901_v34 }
  0x2e   :  { %483 = vmatmul.mubr.bf16.vlgmr.msra.gmra.mxu0 %v705_v32  ;;  %843 = vmatprep.subr.bf16.mxu1 %v959_v58 }
  0x2f   :  { %813 = vmatpush3.bf16.msra.mxu0 %v905_v39  ;;  %562 = vmatprep.mubr.bf16.mxu0 %v710_v50 }
  0x30   :  { %523 = vmatmul.mubr.bf16.vlgmr.msra.gmra.mxu1 %v707_v37  ;;  %814 = vmatprep.subr.bf16.mxu0 %v906_v40 }
  0x31   :  { %844 = vmatpush3.bf16.msra.mxu1 %v922_v57  ;;  %859 = vmatprep.mubr.msk.bf16.mxu1 %vm960_vm0, %v959_v58 }
  0x32   :  { %845 = vmatprep.subr.bf16.mxu1 %v959_v58 }
  0x33   :  { %815 = vmatpush3.bf16.msra.mxu0 %v907_v41 }
  0x34   :  { %816 = vmatprep.subr.bf16.mxu0 %v908_v42 }
  0x35   :  { %846 = vmatpush3.bf16.msra.mxu1 %v923_v59 }
  0x36   :  { %847 = vmatprep.subr.bf16.mxu1 %v959_v58 }
  0x37   :  { %817 = vmatpush3.bf16.msra.mxu0 %v909_v43 }
  0x38   :  { %818 = vmatprep.subr.bf16.mxu0 %v910_v44 }
  0x39   :  { %848 = vmatpush3.bf16.msra.mxu1 %v924_v60 }
  0x3a   :  { %849 = vmatprep.subr.bf16.mxu1 %v959_v58 }
  0x3b   :  { %819 = vmatpush3.bf16.msra.mxu0 %v911_v45 }
  0x3c   :  { %820 = vmatprep.subr.bf16.mxu0 %v912_v46 }
  0x3d   :  { %850 = vmatpush3.bf16.msra.mxu1 %v925_v61 }
  0x3e   :  { %851 = vmatprep.subr.bf16.mxu1 %v959_v58 }
  0x3f   :  { %821 = vmatpush3.bf16.msra.mxu0 %v913_v47 }
  0x40   :  { %822 = vmatprep.subr.bf16.mxu0 %v914_v48 }
  0x41   :  { %852 = vmatpush3.bf16.msra.mxu1 %v926_v62 }
  0x42   :  { %853 = vmatprep.subr.bf16.mxu1 %v959_v58 }
  0x43   :  { %823 = vmatpush3.bf16.msra.mxu0 %v915_v51 }
  0x44   :  { %824 = vmatprep.subr.bf16.mxu0 %v916_v52 }
  0x45   :  { %854 = vmatpush3.bf16.msra.mxu1 %v927_v63 }
  0x46   :  { %855 = vmatprep.subr.bf16.mxu1 %v959_v58 }
  0x47   :  { %825 = vmatpush3.bf16.msra.mxu0 %v917_v53 }
  0x48   :  { %826 = vmatprep.subr.bf16.mxu0 %v918_v54 }
  0x49   :  { %856 = vmatpush3.bf16.msra.mxu1 %v928_v0 }
  0x4a   :  { %857 = vmatprep.subr.bf16.mxu1 %v959_v58 }
  0x4b   :  { %827 = vmatpush3.bf16.msra.mxu0 %v919_v55 }
  0x4d   :  { %858 = vmatpush3.bf16.msra.mxu1 %v929_v1 }
  0x4e   :  { %563 = vmatmul.mubr.bf16.vlgmr.msra.gmra.mxu0 %v709_v56 }
  0xee   :  { %v784_v2 = vpop.f32.mrf.mxu0 }
  0xf0   :  { %v785_v3 = vpop.f32.mrf.mxu0  ;;  %v806_v4 = vpop.f32.mrf.mxu1 }
  0xf1   :  { %v786_v10 = vadd.f32 %v785_v3, %v784_v2 }
  0xf2   :  { %v787_v5 = vpop.f32.mrf.mxu0  ;;  %v807_v6 = vpop.f32.mrf.mxu1 }
  0xf3   :  { %v485_v12 = vadd.f32 %v786_v10, %v704_v11  ;;  %v808_v13 = vadd.f32 %v807_v6, %v806_v4 }
  0xf4   :  { %v788_v7 = vpop.f32.mrf.mxu0  ;;  %v809_v8 = vpop.f32.mrf.mxu1 }
  0xf5   :  { %v525_v16 = vadd.f32 %v808_v13, %v485_v12 }
  0xf6   :  { %v810_v9 = vpop.f32.mrf.mxu1 }
 0x10e   :  { %v828_v14 = vpop.f32.mrf.mxu0 }
 0x110   :  { %v829_v15 = vpop.f32.mrf.mxu0 }
 0x111   :  { %v830_v17 = vadd.f32 %v829_v15, %v828_v14 }
 0x112   :  { %v831_v18 = vpop.f32.mrf.mxu0 }
 0x113   :  { %v565_v19 = vadd.f32 %v830_v17, %v525_v16 }
 0x114   :  { %v832_v20 = vpop.f32.mrf.mxu0 }
 0x115   :  { %v570_v21 = vmax.f32 %v565_v19, 0.0 }
 0x117   :  { %v571_v22 = vpack.c.bf16 %v570_v21, %v570_v21 }
 0x119   :  { %860 = vmatmul.mubr.bf16.vlgmr.msra.gmra.mxu1 %v571_v22 }
 0x1d9   :  { %v677_v26 = vpop.f32.mrf.mxu1 }
 0x1da   :  { %v678_v27 = vadd.f32 %v759_v24, %v677_v26 }
 0x1db   :  { %v861_v28 = vpop.f32.mrf.mxu1 }
 0x1dc   :  { %v683_v29 = vmax.f32 %v678_v27, 0.0 }
 0x1dd   :  { %v680_v30 = vpop.f32.mrf.mxu1 }
 0x1de   :  { %v687_v31 = vsel %vm686_vm1, %v683_v29, -inf }
 0x1df   :  { %688 = vmax.xlane.f32.xlu0 %v687_v31  ;;  %v862_v32 = vpop.f32.mrf.mxu1 }
 0x268   :  { %v689_v33 = vpop.xlane.xlu0 %688 }
 0x269   :  { %v690_v34 = vsub.f32 %v687_v31, %v689_v33 }
 0x26b   :  { %v691_v35 = vmul.f32 1.442695, %v690_v34 }
 0x26d   :  { %930 = vpow2.f32 %v691_v35 }
 0x27a   :  { %v931_v36 = vpop.eup %930 }
 0x27b   :  { %v693_v37 = vsel %vm686_vm1, %v931_v36, 0.0 }
 0x27c   :  { %694 = vadd.xlane.f32.xlu0 %v693_v37 }
 0x305   :  { %v695_v38 = vpop.xlane.xlu0 %694 }
 0x306   :  { %932 = vrcp.f32 %v695_v38 }
 0x313   :  { %v933_v39 = vpop.eup %932 }
 0x314   :  { %v697_v40 = vmul.f32 %v933_v39, %v693_v37 }
 0x316   :  { %698 = vst [vmem:[%s1041_s5] sm:$0xff] %v697_v40 }
 0x317   :  { %703 = vsyncpa [#allocation3], 1 }

</bundles_post_ra>
